<compile_context>
chip_gen: v7x
topology: tpu7x:2x2x1
jax: 0.10.0
libtpu: 0.0.40
codegen_flags: <defaults>
</compile_context>

<pallas_src>
import jax
import jax.numpy as jnp
from jax.experimental import pallas as pl
from jax.experimental.pallas import tpu as pltpu


def inception_kernel(p_ref, w_ref, b_ref, o_ref):
    # p_ref : (nb, Kp, HWp)   im2col patches (rows zero-padded 25*Cin -> Kp)
    # w_ref : (Cout, Kp)      folded 5x5 weight, tap-major / channel-minor
    # b_ref : (Cout, 1)       summed bias (b5 + b3 + b1)
    # o_ref : (nb, Cout, HWp) NCHW output, flattened (padded) spatial on lanes
    w = w_ref[...]
    b = b_ref[...]
    nb = p_ref.shape[0]  # static: 1 (per-core grid) or N (batch folded)
    for n in range(nb):
        acc = jnp.dot(w, p_ref[n], preferred_element_type=jnp.float32)
        o_ref[n] = (acc + b).astype(o_ref.dtype)


def _round_up(x, m):
    return ((x + m - 1) // m) * m


def _single_tensorcore_chip():
    """True for chips with a single TensorCore (v5e / v6e)."""
    try:
        kind = jax.devices()[0].device_kind.lower()
    except Exception:
        return False
    return any(t in kind for t in ("v5 lite", "v5e", "v5litepod", "v6 lite", "v6e"))


def inception_conv2d(x_nchw, w5, b5, w3, b3, w1, b1):
    """x_nchw: (N, Cin, H, W) float32 (PyTorch layout).  Returns (N, Cout, H, W)."""
    N, Cin, H, W = x_nchw.shape
    Cout = w5.shape[0]
    HW = H * W
    K = 25 * Cin
    Kp = _round_up(K, 128)       # pad contraction dim to a clean MXU K-pass
    HWp = _round_up(HW, 128)     # keep output stores lane-dense for any shape

    # --- wrapper-side layout plumbing (plain XLA, not in-kernel) -------------
    # Spatial pad for the folded 5x5 "same" conv; stays NCHW.
    xp = jnp.pad(x_nchw, ((0, 0), (0, 0), (2, 2), (2, 2)))

    # im2col: (N, 25*Cin, H*W), row index = (kh*5 + kw)*Cin + c.
    cols = []
    for kh in range(5):
        for kw in range(5):
            patch = jax.lax.slice(xp, (0, 0, kh, kw), (N, Cin, kh + H, kw + W))
            cols.append(patch.reshape(N, Cin, HW))
    patches = jnp.concatenate(cols, axis=1)  # (N, K, HW)
    patches = jnp.pad(patches, ((0, 0), (0, Kp - K), (0, HWp - HW)))

    # Fold the three convs into one 5x5 kernel (exact: a k<5 same-padding conv
    # equals a zero-padded 5x5 same-padding conv).
    wf = (
        w5
        + jnp.pad(w3, ((0, 0), (0, 0), (1, 1), (1, 1)))
        + jnp.pad(w1, ((0, 0), (0, 0), (2, 2), (2, 2)))
    )
    # (Cout, Cin, 5, 5) -> (Cout, 5, 5, Cin) -> (Cout, 25*Cin); column index
    # = (kh*5 + kw)*Cin + c, matching the patch-row ordering above.
    w_flat = jnp.transpose(wf, (0, 2, 3, 1)).reshape(Cout, K)
    w_flat = jnp.pad(w_flat, ((0, 0), (0, Kp - K))).astype(jnp.float32)
    bias = (b5 + b3 + b1).reshape(Cout, 1).astype(jnp.float32)

    # --- batch strategy: fold on single-TC chips, parallel grid otherwise ----
    fold_batch = (_single_tensorcore_chip() and N <= 8) or N == 1
    if fold_batch:
        grid = (1,)
        nb = N
    else:
        grid = (N,)
        nb = 1

    cost = pl.CostEstimate(
        flops=2 * N * Cout * K * HW,
        transcendentals=0,
        bytes_accessed=4 * (N * Kp * HWp + Cout * Kp + Cout + N * Cout * HWp),
    )

    out = pl.pallas_call(
        inception_kernel,
        out_shape=jax.ShapeDtypeStruct((N, Cout, HWp), x_nchw.dtype),
        grid=grid,
        in_specs=[
            pl.BlockSpec((nb, Kp, HWp), lambda n: (n, 0, 0)),
            pl.BlockSpec((Cout, Kp), lambda n: (0, 0)),
            pl.BlockSpec((Cout, 1), lambda n: (0, 0)),
        ],
        out_specs=pl.BlockSpec((nb, Cout, HWp), lambda n: (n, 0, 0)),
        compiler_params=pltpu.CompilerParams(dimension_semantics=("parallel",)),
        cost_estimate=cost,
    )(patches, w_flat, bias)

    # Crop padded lanes (no-op when H*W is already a multiple of 128) and
    # reshape back to (N, Cout, H, W) — bit-identical, free in XLA.
    return out[:, :, :HW].reshape(N, Cout, H, W)


def _reference(x_nchw, w5, b5, w3, b3, w1, b1):
    """Pure-JAX reference (lax.conv) matching the PyTorch module."""
    def conv(x, w, b, pad):
        y = jax.lax.conv_general_dilated(
            x, w, window_strides=(1, 1), padding=((pad, pad), (pad, pad)),
            dimension_numbers=("NCHW", "OIHW", "NCHW"))
        return y + b[None, :, None, None]
    return conv(x_nchw, w5, b5, 2) + conv(x_nchw, w3, b3, 1) + conv(x_nchw, w1, b1, 0)


if __name__ == "__main__":
    key = jax.random.PRNGKey(0)
    k_x, k5, k3, k1, kb5, kb3, kb1 = jax.random.split(key, 7)

    N, Cin, Cout, H, W = 2, 4, 8, 16, 16

    x = jax.random.normal(k_x, (N, Cin, H, W), jnp.float32)
    w5 = jax.random.normal(k5, (Cout, Cin, 5, 5), jnp.float32) * 0.1
    w3 = jax.random.normal(k3, (Cout, Cin, 3, 3), jnp.float32) * 0.1
    w1 = jax.random.normal(k1, (Cout, Cin, 1, 1), jnp.float32) * 0.1
    b5 = jax.random.normal(kb5, (Cout,), jnp.float32) * 0.1
    b3 = jax.random.normal(kb3, (Cout,), jnp.float32) * 0.1
    b1 = jax.random.normal(kb1, (Cout,), jnp.float32) * 0.1

    out = inception_conv2d(x, w5, b5, w3, b3, w1, b1)
    out = jax.block_until_ready(out)

    ref = _reference(x, w5, b5, w3, b3, w1, b1)
    assert out.shape == (N, Cout, H, W)
    assert jnp.allclose(out, ref, atol=1e-3, rtol=1e-3), "mismatch vs reference"

    print("KERNEL_OK")
</pallas_src>

<mosaic_0001>
module attributes {stable_mosaic.version = 11 : i64} {
  func.func @inception_kernel(%arg0: i32, %arg1: memref<1x128x256xf32, #tpu.memory_space<vmem>>, %arg2: memref<8x128xf32, #tpu.memory_space<vmem>>, %arg3: memref<8x1xf32, #tpu.memory_space<vmem>>, %arg4: memref<1x8x256xf32, #tpu.memory_space<vmem>>) attributes {dimension_semantics = [#tpu.dimension_semantics<parallel>], iteration_bounds = array<i64: 2>, scalar_prefetch = 0 : i64, scratch_operands = 0 : i64, tpu.core_type = #tpu.core_type<tc>, window_params = [{transform_indices = @transform_0, window_bounds = array<i64: 1, 128, 256>}, {pipeline_mode = #tpu.pipeline_mode<synchronous>, transform_indices = @transform_1, window_bounds = array<i64: 8, 128>}, {pipeline_mode = #tpu.pipeline_mode<synchronous>, transform_indices = @transform_2, window_bounds = array<i64: 8, 1>}, {transform_indices = @transform_3, window_bounds = array<i64: 1, 8, 256>}]} {
    %c0 = arith.constant 0 : index
    %c0_0 = arith.constant 0 : index
    %0 = vector.load %arg2[%c0, %c0_0] : memref<8x128xf32, #tpu.memory_space<vmem>>, vector<8x128xf32>
    %c0_1 = arith.constant 0 : index
    %c0_2 = arith.constant 0 : index
    %1 = vector.load %arg3[%c0_1, %c0_2] : memref<8x1xf32, #tpu.memory_space<vmem>>, vector<8x1xf32>
    %c0_3 = arith.constant 0 : index
    %c0_4 = arith.constant 0 : index
    %c0_5 = arith.constant 0 : index
    %2 = vector.load %arg1[%c0_3, %c0_4, %c0_5] : memref<1x128x256xf32, #tpu.memory_space<vmem>>, vector<1x128x256xf32>
    %3 = vector.shape_cast %2 : vector<1x128x256xf32> to vector<128x256xf32>
    %cst = arith.constant dense<0.000000e+00> : vector<8x256xf32>
    %4 = tpu.matmul %0, %3, %cst {dimension_numbers = #tpu.dot_dimension_numbers<[1], [0], [0], [1], [0, 0, 1, 1], [], []>} : vector<8x128xf32>, vector<128x256xf32>, vector<8x256xf32> -> vector<8x256xf32>
    %5 = vector.broadcast %1 : vector<8x1xf32> to vector<8x256xf32>
    %6 = arith.addf %4, %5 : vector<8x256xf32>
    %c0_6 = arith.constant 0 : index
    %c0_7 = arith.constant 0 : index
    %c0_8 = arith.constant 0 : index
    %7 = vector.load %arg4[%c0_6, %c0_7, %c0_8] : memref<1x8x256xf32, #tpu.memory_space<vmem>>, vector<1x8x256xf32>
    %8 = vector.shape_cast %7 : vector<1x8x256xf32> to vector<8x256xf32>
    %9 = vector.shape_cast %6 : vector<8x256xf32> to vector<1x8x256xf32>
    tpu.vector_store %arg4[%c0_6, %c0_7, %c0_8], %9 {strides = array<i32>} : memref<1x8x256xf32, #tpu.memory_space<vmem>>, vector<1x8x256xf32>,
    return
  }
  func.func @transform_0(%arg0: i32) -> (i32, i32, i32) {
    %c0_i32 = arith.constant 0 : i32
    %c0_i32_0 = arith.constant 0 : i32
    %c0_i32_1 = arith.constant 0 : i32
    return %arg0, %c0_i32, %c0_i32_0 : i32, i32, i32
  }
  func.func @transform_1(%arg0: i32) -> (i32, i32) {
    %c0_i32 = arith.constant 0 : i32
    %c0_i32_0 = arith.constant 0 : i32
    %c0_i32_1 = arith.constant 0 : i32
    return %c0_i32, %c0_i32_0 : i32, i32
  }
  func.func @transform_2(%arg0: i32) -> (i32, i32) {
    %c0_i32 = arith.constant 0 : i32
    %c0_i32_0 = arith.constant 0 : i32
    %c0_i32_1 = arith.constant 0 : i32
    return %c0_i32, %c0_i32_0 : i32, i32
  }
  func.func @transform_3(%arg0: i32) -> (i32, i32, i32) {
    %c0_i32 = arith.constant 0 : i32
    %c0_i32_0 = arith.constant 0 : i32
    %c0_i32_1 = arith.constant 0 : i32
    return %arg0, %c0_i32, %c0_i32_0 : i32, i32, i32
  }
}

</mosaic_0001>

<bundles_post_ra>
// kernel: tpu_custom_call.1
= control target key start
LH: loop header
LB: loop body
LE: loop exit
PB: predicated region body
PF: predicated region fallthrough
CT: control target
= control target key end

     0   :  { %8 = vsyncpa [#allocation3], 0  ;;  %s810_s0 = inlined_call_operand.hbm [shape: f32[2,128,256], index: 0, kind: input, shape index: {}]   ;;  %s811_s1 = inlined_call_operand.vmem [shape: f32[8,128], index: 1, kind: input, shape index: {}]   ;;  %s812_s2 = inlined_call_operand.vmem [shape: f32[8,1], index: 2, kind: input, shape index: {}]   ;;  %s813_s3 = inlined_call_operand.hbm [shape: f32[2,8,256], index: 3, kind: output, shape index: {}]  }
   0x1   :  { %10 = vsyncpa [#allocation3 + $0x1], 0 }
   0x2   :  { %11 = vsyncpa [#allocation4], 0 }
   0x3   :  { %13 = vsyncpa [#allocation4 + $0x1], 0  ;;  %s609_s12 = smov 0   ;;  %s611_s13 = smov 0  }
   0x4   :  { %s613_s14 = smov 0   ;;  %s615_s15 = smov 0  }
   0x5 LB: > { %s630_s16 = sadd.s32 4294967295, %s581_s15   ;;  %s386_s17 = sadd.s32 4294967294, %s581_s15   ;;  %s581_s15 = sphi %s615_s15, %s826_s15   ;;  %s577_s14 = sphi %s613_s14, %s825_s14   ;;  %s573_s13 = sphi %s611_s13, %s824_s13   ;;  %s569_s12 = sphi %s609_s12, %s823_s12  }
   0x6   : > { %s634_s18 = sadd.s32 1, %s581_s15   ;;  %s26_s19 = sadd.s32 1, %s577_s14 }
   0x7   : > { %s23_s20 = ssub.s32 %s581_s15, %s634_s18  ;;  %p33_p0 = scmp.ne.s32.totalorder %s577_s14, %s573_s13 }
   0x8   : > { %p24_p1 = scmp.eq.s32.totalorder %s23_s20, 0  ;;  %p34_p2 = scmp.eq.s32.totalorder %s581_s15, 0 }
   0x9   : > { %p39_p3 = scmp.ne.s32.totalorder %s573_s13, %s569_s12  ;;  %p40_p4 = scmp.eq.s32.totalorder %s630_s16, 0 }
   0xa   : > { %s646_s21 = scalar_select %p24_p1, %s577_s14, %s26_s19  }
   0xb   : > { %p648_p5 = por %p34_p2, %p33_p0  ;;  %p652_p6 = por %p40_p4, %p39_p3 }
   0xc   : > { %p105_p7 = scmp.eq.s32.totalorder %s630_s16, 1  ;;  %p111_p8 = scmp.eq.s32.totalorder %s386_s17, 1 }
   0xd   : > { %p446_p10 = scmp.lt.s32.totalorder %s581_s15, 2  ;;  %s137_s26 = sand.u32 1, %s577_s14  }
   0xe   : > { %p659_p11 = por %p105_p7, %p33_p0  ;;  %p663_p12 = por %p111_p8, %p39_p3 }
   0xf   : > { %s400_s27 = sshll.u32 %s581_s15, 12  ;;  %s389_s28 = sshll.u32 %s137_s26, 8 }
  0x10   : > { %s817_s24 = scalar_select %p659_p11, 1, 0 }
  0x11   : > { %s818_s25 = scalar_select %p663_p12, 1, 0 }
  0x12   : > { %s672_s4 = scalar_lea.hbm %s810_s0, %s400_s27  ;;  %s141_s5 = scalar_lea.vmem [#allocation2], %s389_s28 }
  0x13   : > { %s148_s6 = sshll.u32 %s141_s5, 4  ;;  %p676_p13 = pnand %p446_p10, %p648_p5  ;;  %s680_s6 = int_to_ptr.vmem [resolvable:$true] %s148_s6 }
  0x14   : > { %s682_s8 = scalar_lea.sflag [#allocation3], %s137_s26  ;;  %s485_s9 = scalar_lea.hbm %s672_s4, 4096 }
  0x15   : > { %p486_p0 = scmp.ne.s32.totalorder %s672_s4, %s485_s9  ;;  %p487_p1 = pneg %p676_p13 }
  0x16   : > { %s490_s17 = scalar_lea.hbm %s810_s0, 8192  ;;  %p491_p4 = scmp.lt.u32.totalorder %s672_s4, %s810_s0 }
  0x17   : > { %p488_p2 = pnand %p487_p1, %p486_p0  ;;  %p492_p5 = scmp.lt.u32.totalorder %s490_s17, %s485_s9 }
  0x18   : > { %p494_p8 = scmp.lt.u32.totalorder %s485_s9, %s672_s4 }
  0x19   : > { %p489_p3 = pneg %p488_p2  ;;  %p493_p7 = por %p492_p5, %p491_p4 }
  0x1b   : > { %p495_p10 = por %p494_p8, %p493_p7 }
  0x1d   : > { %p496_p9 = pnand %p495_p10, %p489_p3 }
  0x1f   : > { %499 = shalt.err (!%p496_p9)
}
  0x20   : > { %s500_s22 = scalar_lea.vmem %s680_s6, 4096  ;;  %s583_s26 = smov [#allocation2]  }
  0x21   : > { %p501_p0 = scmp.ne.s32.totalorder %s680_s6, %s500_s22  ;;  %s505_s27 = sshll.u32 %s583_s26, 4  ;;  %s506_s27 = int_to_ptr.vmem [resolvable:$false] %s505_s27 }
  0x22   : > { %s507_s28 = scalar_lea.vmem %s506_s27, 8192  ;;  %p508_p11 = scmp.lt.s32.totalorder %s680_s6, %s506_s27 }
  0x23   : > { %p503_p2 = pnand %p501_p0, %p487_p1  ;;  %p509_p4 = scmp.lt.s32.totalorder %s507_s28, %s500_s22 }
  0x25   : > { %p504_p12 = pneg %p503_p2  ;;  %p510_p5 = por %p509_p4, %p508_p11 }
  0x27   : > { %p511_p7 = pnand %p510_p5, %p504_p12 }
  0x29   : > { %514 = shalt.err (!%p511_p7)
}
  0x2a   : > { %s584_s29 = smov 256   ;;  %s585_s30 = smov 16  }
  0x2b   : > { %441 = dma.hbm_to_vmem [thread:$0]  (!%p676_p13), %s672_s4, 4096, %s680_s6, %s682_s8, %s584_s29, %s584_s29, %s585_s30  }
  0x2c   : > { %p392_p9 = scmp.ge.s32.totalorder %s581_s15, 1  ;;  %p156_p1 = scmp.lt.s32.totalorder %s581_s15, 3 }
  0x2e   : > { %p157_p3 = pnand %p392_p9, %p156_p1 }
  0x2f   : > { %s713_s5 = sand.u32 (!%p157_p3), 1, %s573_s13  }
  0x30   : > { %160 = sbr.rel (%p157_p3) target bundleno = 320 (0x140), region = 32  ;;  %s393_s9 = sshll.u32 (!%p157_p3), %s713_s5, 8 }
  0x31   : > { %s163_s10 = scalar_lea.sflag (!%p157_p3), [#allocation3], %s713_s5  ;;  %s717_s11 = scalar_lea.vmem (!%p157_p3), [#allocation2], %s393_s9 }
  0x37   : > { %560 = dma.done.wait (%p652_p6), %s163_s10, 4096  }
  0x38   : > { %562 = vsyncadd (%p652_p6), %s163_s10, 4294963200  ;;  %v586_v0 = vmov 0.0   ;;  %v587_v1 = vmov 0   ;;  %v192_v2 = vld [vmem:[%s717_s11 + $0x8] sm:$0xff]  ;;  %v194_v3 = vld [vmem:[%s717_s11 + $0x18] sm:$0xff]  ;;  %s394_s8 = sshll.u32 %s713_s5, 4 }
  0x39   : > { %292 = vmatprep.mubr.f32.mxu0 %v586_v0  ;;  %484 = vset.pattern.permute.xlu0 %v587_v1  ;;  %v191_v4 = vld [vmem:[%s717_s11] sm:$0xff]  ;;  %v402_v5 = vpack.c.bf16 %v194_v3, %v192_v2  ;;  %v193_v6 = vld [vmem:[%s717_s11 + $0x10] sm:$0xff]  ;;  %v196_v7 = vld [vmem:[%s717_s11 + $0x28] sm:$0xff]  ;;  %s401_s17 = sshll.u32 %s630_s16, 8  ;;  %s188_s19 = scalar_lea.vmem [#allocation5], %s394_s8 }
  0x3a   : > { %v198_v8 = vld [vmem:[%s717_s11 + $0x38] sm:$0xff]  ;;  %v404_v9 = vpack.c.bf16 %v193_v6, %v191_v4  ;;  %v195_v11 = vld [vmem:[%s717_s11 + $0x20] sm:$0xff]  ;;  %v197_v12 = vld [vmem:[%s717_s11 + $0x30] sm:$0xff]  ;;  %s316_s20 = sshll.u32 %s188_s19, 4  ;;  %s766_s27 = scalar_lea.hbm %s813_s3, %s401_s17  ;;  %s768_s20 = int_to_ptr.vmem [resolvable:$true] %s316_s20 }
  0x3b   : > { %v406_v10 = vpack.c.bf16 %v198_v8, %v196_v7  ;;  %v200_v13 = vld [vmem:[%s717_s11 + $0x48] sm:$0xff]  ;;  %403 = vmatprep.subr.bf16.mxu0 %v402_v5  ;;  %v202_v14 = vld [vmem:[%s717_s11 + $0x58] sm:$0xff]  ;;  %v408_v15 = vpack.c.bf16 %v197_v12, %v195_v11  ;;  %v199_v17 = vld [vmem:[%s717_s11 + $0x40] sm:$0xff]  ;;  %s302_s28 = scalar_lea.sflag [#allocation4], %s713_s5  ;;  %s515_s16 = scalar_lea.vmem %s768_s20, 256 }
  0x3c   : > { %405 = vmatpush1.bf16.msra.mxu0 %v404_v9  ;;  %v410_v16 = vpack.c.bf16 %v202_v14, %v200_v13  ;;  %v201_v18 = vld [vmem:[%s717_s11 + $0x50] sm:$0xff]  ;;  %v204_v19 = vld [vmem:[%s717_s11 + $0x68] sm:$0xff]  ;;  %v206_v20 = vld [vmem:[%s717_s11 + $0x78] sm:$0xff]  ;;  %p516_p6 = scmp.ne.s32.totalorder %s768_s20, %s515_s16  ;;  %p820_p11 = scmp.ne.s32.totalorder %s817_s24, 0 }
  0x3d   : > { %407 = vmatprep.subr.bf16.mxu0 %v406_v10  ;;  %v412_v21 = vpack.c.bf16 %v201_v18, %v199_v17  ;;  %v414_v22 = vpack.c.bf16 %v206_v20, %v204_v19  ;;  %v203_v23 = vld [vmem:[%s717_s11 + $0x60] sm:$0xff]  ;;  %v205_v24 = vld [vmem:[%s717_s11 + $0x70] sm:$0xff]  ;;  %v208_v25 = vld [vmem:[%s717_s11 + $0x88] sm:$0xff]  ;;  %s588_s29 = smov [#allocation5]  }
  0x3e   : > { %v210_v26 = vld [vmem:[%s717_s11 + $0x98] sm:$0xff]  ;;  %v190_v27 = vld [vmem:[%s812_s2] sm:$0xff]  ;;  %v416_v28 = vpack.c.bf16 %v205_v24, %v203_v23  ;;  %v209_v31 = vld [vmem:[%s717_s11 + $0x90] sm:$0xff]  ;;  %p517_p12 = pnand %p516_p6, %p820_p11  ;;  %s519_s30 = sshll.u32 %s588_s29, 4  ;;  %s520_s30 = int_to_ptr.vmem [resolvable:$false] %s519_s30 }
  0x3f   : > { %225 = vperm.xlu0 %484, %v190_v27   ;;  %v418_v29 = vpack.c.bf16 %v210_v26, %v208_v25  ;;  %v207_v30 = vld [vmem:[%s717_s11 + $0x80] sm:$0xff]  ;;  %v212_v32 = vld [vmem:[%s717_s11 + $0xa8] sm:$0xff]  ;;  %v214_v33 = vld [vmem:[%s717_s11 + $0xb8] sm:$0xff]  ;;  %s521_s9 = scalar_lea.vmem %s520_s30, 512  ;;  %p522_p8 = scmp.lt.s32.totalorder %s768_s20, %s520_s30 }
  0x40   : > { %409 = vmatpush1.bf16.msra.mxu0 %v408_v15  ;;  %v420_v34 = vpack.c.bf16 %v209_v31, %v207_v30  ;;  %v422_v35 = vpack.c.bf16 %v214_v33, %v212_v32  ;;  %v211_v36 = vld [vmem:[%s717_s11 + $0xa0] sm:$0xff]  ;;  %v213_v37 = vld [vmem:[%s717_s11 + $0xb0] sm:$0xff]  ;;  %v216_v38 = vld [vmem:[%s717_s11 + $0xc8] sm:$0xff]  ;;  %p518_p13 = pneg %p517_p12  ;;  %p523_p10 = scmp.lt.s32.totalorder %s521_s9, %s515_s16 }
  0x41   : > { %411 = vmatprep.subr.bf16.mxu0 %v410_v16  ;;  %v218_v39 = vld [vmem:[%s717_s11 + $0xd8] sm:$0xff]  ;;  %v424_v40 = vpack.c.bf16 %v213_v37, %v211_v36  ;;  %v215_v42 = vld [vmem:[%s717_s11 + $0xc0] sm:$0xff]  ;;  %v217_v43 = vld [vmem:[%s717_s11 + $0xd0] sm:$0xff] }
  0x42   : > { %v426_v41 = vpack.c.bf16 %v218_v39, %v216_v38  ;;  %v220_v44 = vld [vmem:[%s717_s11 + $0xe8] sm:$0xff]  ;;  %v222_v45 = vld [vmem:[%s717_s11 + $0xf8] sm:$0xff]  ;;  %v428_v46 = vpack.c.bf16 %v217_v43, %v215_v42  ;;  %v219_v48 = vld [vmem:[%s717_s11 + $0xe0] sm:$0xff]  ;;  %p524_p0 = por %p523_p10, %p522_p8 }
  0x43   : > { %v430_v47 = vpack.c.bf16 %v222_v45, %v220_v44  ;;  %v221_v49 = vld [vmem:[%s717_s11 + $0xf0] sm:$0xff]  ;;  %v189_v51 = vld [vmem:[%s811_s1] sm:$0xff] }
  0x44   : > { %413 = vmatpush1.bf16.msra.mxu0 %v412_v21  ;;  %v432_v50 = vpack.c.bf16 %v221_v49, %v219_v48  ;;  %p525_p2 = pnand %p524_p0, %p518_p13 }
  0x45   : > { %415 = vmatprep.subr.bf16.mxu0 %v414_v22 }
  0x48   : > { %417 = vmatpush1.bf16.msra.mxu0 %v416_v28 }
  0x49   : > { %419 = vmatprep.subr.bf16.mxu0 %v418_v29 }
  0x4c   : > { %421 = vmatpush1.bf16.msra.mxu0 %v420_v34 }
  0x4d   : > { %423 = vmatprep.subr.bf16.mxu0 %v422_v35 }
  0x50   : > { %425 = vmatpush1.bf16.msra.mxu0 %v424_v40 }
  0x51   : > { %427 = vmatprep.subr.bf16.mxu0 %v426_v41 }
  0x54   : > { %429 = vmatpush1.bf16.msra.mxu0 %v428_v46 }
  0x55   : > { %431 = vmatprep.subr.bf16.mxu0 %v430_v47 }
  0x58   : > { %433 = vmatpush1.bf16.msra.mxu0 %v432_v50 }
  0x5b   : > { %293 = vmatmul.mubr.f32.vlgmr.msra.gmra.mrb[0].mxu0 %v189_v51 }
  0xbe   : > { %v226_v52 = vpop.permute.xlu0 %225 }
 0x12e   : > { %v294_v53 = vpop.f32.mrb[0].mxu0 }
 0x12f   : > { %v295_v54 = vadd.f32 %v294_v53, %v226_v52  ;;  %v296_v55 = vpop.f32.mrb[1].mxu0 }
 0x130   : > { %v297_v56 = vadd.f32 %v296_v55, %v226_v52 }
 0x131   : > { %299 = vst [vmem:[%s188_s19] sm:$0xff] %v295_v54 }
 0x132   : > { %300 = vst [vmem:[%s188_s19 + $0x8] sm:$0xff] %v297_v56 }
 0x133   : > { %528 = shalt.err (!%p525_p2)
}
 0x134   : > { %s529_s5 = scalar_lea.hbm %s766_s27, 256  ;;  %s533_s23 = scalar_lea.hbm %s813_s3, 512 }
 0x135   : > { %p530_p4 = scmp.ne.s32.totalorder %s766_s27, %s529_s5  ;;  %p534_p9 = scmp.lt.u32.totalorder %s766_s27, %s813_s3 }
 0x136   : > { %p535_p1 = scmp.lt.u32.totalorder %s533_s23, %s529_s5  ;;  %p537_p6 = scmp.lt.u32.totalorder %s529_s5, %s766_s27 }
 0x137   : > { %p531_p5 = pnand %p530_p4, %p820_p11 }
 0x138   : > { %p536_p3 = por %p535_p1, %p534_p9 }
 0x139   : > { %p532_p7 = pneg %p531_p5 }
 0x13a   : > { %p538_p12 = por %p537_p6, %p536_p3 }
 0x13c   : > { %p539_p13 = pnand %p538_p12, %p532_p7 }
 0x13e   : > { %542 = shalt.err (!%p539_p13)
}
 0x13f   : > { %436 = dma.vmem_to_hbm [thread:$0]  (%p820_p11), %s768_s20, 256, %s766_s27, %s302_s28  }
 0x140 PF: > { %s328_s7 = sand.u32 1, %s569_s12   ;;  %p821_p8 = scmp.ne.s32.totalorder %s818_s25, 0 }
 0x141   : > { %p822_p10 = scmp.ge.s32.totalorder %s581_s15, 2  ;;  %s329_s8 = scalar_lea.sflag [#allocation4], %s328_s7 }
 0x143   : > { %p443_p0 = pnand %p822_p10, %p821_p8 }
 0x145   : > { %564 = dma.done.wait (!%p443_p0), %s329_s8, 256  }
 0x146   : > { %566 = vsyncadd (!%p443_p0), %s329_s8, 4294967040  ;;  %p16_p2 = scmp.ge.s32.totalorder %s634_s18, 4   ;;  %s823_s12 = smov %s573_s13 }
 0x147   : > { %s824_s13 = smov %s577_s14  ;;  %s825_s14 = smov %s646_s21 }
 0x148   : > { %s826_s15 = smov %s634_s18  ;;  %18 = sbr.rel (!%p16_p2) target bundleno = 5 (0x5), region = 77 }
 0x14f   :  { %334 = vsyncpa [#allocation3], 1 }
 0x150   :  { %336 = vsyncpa [#allocation3 + $0x1], 1 }
 0x151   :  { %337 = vsyncpa [#allocation4], 1 }
 0x152   :  { %339 = vsyncpa [#allocation4 + $0x1], 1 }

</bundles_post_ra>
